<compile_context>
chip_gen: v7x
topology: tpu7x:2x2x1
jax: 0.10.0
libtpu: 0.0.40
codegen_flags: <defaults>
</compile_context>

<pallas_src>
import numpy as np
import jax
import jax.numpy as jnp
from jax import lax
from jax.experimental import pallas as pl
from jax.experimental.pallas import tpu as pltpu


def ssd_head_kernel(p_ref, w1_ref, b1_ref, w2_ref, b2_ref, o_ref):
    """Fused SSD prediction head for one (batch, row-tile) block.

    p_ref : (1, TR, 9*C)  bf16  im2col patches of the zero-padded feature map
    w1_ref: (9*C, C)      bf16  3x3 conv weights with eval-mode BatchNorm folded in
    b1_ref: (1, C)        f32   3x3 conv bias with BatchNorm folded in
    w2_ref: (C, CoutP)    bf16  1x1 conv weights, Cout zero-padded to a lane width (128)
    b2_ref: (1, CoutP)    f32   1x1 conv bias, zero-padded
    o_ref : (1, TR, CoutP) f32  lane-dense output slab (rows = flattened H*W tile)
    """
    # 3x3 conv (+ folded BatchNorm) as ONE MXU matmul with K = 9*C, f32 accumulation.
    h = jnp.dot(p_ref[0], w1_ref[...], preferred_element_type=jnp.float32)
    h = jnp.maximum(h + b1_ref[...], 0.0)                      # bias + ReLU (f32 epilogue)
    # 1x1 conv == channel matmul with a lane-padded N dim.
    y = jnp.dot(h.astype(jnp.bfloat16), w2_ref[...],
                preferred_element_type=jnp.float32)
    o_ref[0] = y + b2_ref[...]


def _pick_row_tile(total_rows, target=128):
    """Largest multiple of 8 dividing total_rows that is <= target (else the full extent)."""
    if total_rows <= target:
        return total_rows
    for t in range(target, 7, -1):
        if total_rows % t == 0 and t % 8 == 0:
            return t
    return total_rows


def im2col_3x3(x_nhwc):
    """(N, H, W, C) -> (N, H*W, 9*C) patches for a 3x3 'same' conv (pad=1).

    Tap order is (dy, dx, cin), matching w1.reshape(9*C, Cout) of an HWIO weight.
    The spatial zero-pad is fused into this gather (no separate padded copy is
    round-tripped through HBM by the kernel itself).
    """
    N, H, W, C = x_nhwc.shape
    xp = jnp.pad(x_nhwc, ((0, 0), (1, 1), (1, 1), (0, 0)))
    taps = [xp[:, dy:dy + H, dx:dx + W, :] for dy in range(3) for dx in range(3)]
    return jnp.concatenate(taps, axis=-1).reshape(N, H * W, 9 * C)


def ssd_head_pallas(feat_nhwc, params, *, row_tile_target=128):
    """Run one fused SSD head level on an NHWC feature map."""
    w1, b1, scale, shift, w2, b2 = params
    N, H, W, C = feat_nhwc.shape
    Cout = w2.shape[1]
    CoutP = ((Cout + 127) // 128) * 128                       # lane-dense output width

    # Fold eval-mode BatchNorm into the 3x3 conv:  scale*(conv+b1)+shift
    #   == conv(x, w1*scale) + (b1*scale + shift).
    w1f = (w1 * scale.reshape(1, 1, 1, C)).reshape(9 * C, C)
    b1f = (b1 * scale + shift).astype(jnp.float32)            # (1, C)

    # Zero-pad the 1x1 conv to a full 128-lane output width.
    w2p = jnp.zeros((C, CoutP), jnp.float32).at[:, :Cout].set(w2)
    b2p = jnp.zeros((1, CoutP), jnp.float32).at[:, :Cout].set(b2)

    # bf16 MXU operands (accumulation stays f32 inside the kernel).
    patches = im2col_3x3(feat_nhwc.astype(jnp.bfloat16))      # (N, H*W, 9*C) bf16
    w1b = w1f.astype(jnp.bfloat16)
    w2b = w2p.astype(jnp.bfloat16)

    HW = H * W
    K9 = 9 * C
    TR = _pick_row_tile(HW, row_tile_target)
    nR = HW // TR

    out2d = pl.pallas_call(
        ssd_head_kernel,
        out_shape=jax.ShapeDtypeStruct((N, HW, CoutP), jnp.float32),
        grid_spec=pltpu.PrefetchScalarGridSpec(
            num_scalar_prefetch=0,
            grid=(N, nR),
            in_specs=[
                pl.BlockSpec((1, TR, K9), lambda n, r: (n, r, 0)),
                # TODO(synk): at production usize=256 on v7x, mark these grid-invariant
                # weight/bias specs single-buffered (pipeline_mode=pl.Buffered(1)) to
                # reclaim the duplicated ~1.2 MB w1 buffer for deeper input buffering.
                pl.BlockSpec((K9, C), lambda n, r: (0, 0)),
                pl.BlockSpec((1, C), lambda n, r: (0, 0)),
                pl.BlockSpec((C, CoutP), lambda n, r: (0, 0)),
                pl.BlockSpec((1, CoutP), lambda n, r: (0, 0)),
            ],
            out_specs=pl.BlockSpec((1, TR, CoutP), lambda n, r: (n, r, 0)),
        ),
        compiler_params=pltpu.CompilerParams(
            dimension_semantics=("parallel", "parallel")),
    )(patches, w1b, b1f, w2b, b2p)

    # Reshape the lane-dense slab back to NHWC (== PyTorch permute(0,2,3,1) output)
    # and drop the channel padding — free layout plumbing outside the kernel.
    return out2d.reshape(N, H, W, CoutP)[..., :Cout]


def standin_backbone_fpn(x_nchw, proj_weights):
    # TODO(synk): BackBoneNet / FPNNet bodies are not part of the given module source;
    # this stand-in produces an FPN-like pyramid of `usize`-channel maps with plain-JAX
    # strided 3x3 convs (glue, not the hot path the SSDNet module itself defines).
    feats = []
    cur = x_nchw
    for w in proj_weights:
        cur = lax.conv_general_dilated(
            cur, w, window_strides=(2, 2), padding="SAME",
            dimension_numbers=("NCHW", "OIHW", "NCHW"))
        cur = jax.nn.relu(cur)
        feats.append(jnp.transpose(cur, (0, 2, 3, 1)))  # -> NHWC for the Pallas head
    return feats


def ssd_head_reference(feat_nhwc, params):
    """Pure-JAX f32 reference of the head math (mirrors the PyTorch nn.Sequential)."""
    w1, b1, scale, shift, w2, b2 = params
    x = jnp.transpose(feat_nhwc, (0, 3, 1, 2))                     # NCHW
    w_oihw = jnp.transpose(w1, (3, 2, 0, 1))                       # (Cout, Cin, 3, 3)
    y = lax.conv_general_dilated(x, w_oihw, (1, 1), "SAME",
                                 dimension_numbers=("NCHW", "OIHW", "NCHW"))
    y = y + b1.reshape(1, -1, 1, 1)
    y = y * scale.reshape(1, -1, 1, 1) + shift.reshape(1, -1, 1, 1)
    y = jax.nn.relu(y)
    w2_oihw = jnp.transpose(w2, (1, 0)).reshape(w2.shape[1], w2.shape[0], 1, 1)
    y = lax.conv_general_dilated(y, w2_oihw, (1, 1), "VALID",
                                 dimension_numbers=("NCHW", "OIHW", "NCHW"))
    y = y + b2.reshape(1, -1, 1, 1)
    return jnp.transpose(y, (0, 2, 3, 1))                          # permute(0, 2, 3, 1)


if __name__ == "__main__":
    key = jax.random.PRNGKey(0)
    keys = iter(jax.random.split(key, 64))

    # Small shapes consistent with the module (usize scaled down from 256 to 32).
    N, Cin, Himg, Wimg = 2, 3, 32, 32
    usize = 32
    num_classes, num_anchors = 1, 6
    num_features = 3
    cout = num_anchors * (5 + num_classes)   # 36

    x = jax.random.normal(next(keys), (N, Cin, Himg, Wimg), jnp.float32)

    # Stand-in backbone/FPN projection weights (deterministic synthetic init).
    proj_weights = []
    c_prev = Cin
    for _ in range(num_features):
        proj_weights.append(
            0.1 * jax.random.normal(next(keys), (usize, c_prev, 3, 3), jnp.float32))
        c_prev = usize

    # SSD head parameters, one set per feature level (deterministic synthetic init).
    eps = 1e-5
    head_params = []
    for _ in range(num_features):
        w1 = 0.05 * jax.random.normal(next(keys), (3, 3, usize, usize), jnp.float32)
        b1 = 0.05 * jax.random.normal(next(keys), (1, usize), jnp.float32)
        gamma = 1.0 + 0.1 * jax.random.normal(next(keys), (1, usize), jnp.float32)
        beta = 0.1 * jax.random.normal(next(keys), (1, usize), jnp.float32)
        rmean = 0.1 * jax.random.normal(next(keys), (1, usize), jnp.float32)
        rvar = jnp.abs(jax.random.normal(next(keys), (1, usize), jnp.float32)) + 0.5
        scale = gamma / jnp.sqrt(rvar + eps)
        shift = beta - rmean * scale
        w2 = 0.05 * jax.random.normal(next(keys), (usize, cout), jnp.float32)
        b2 = 0.05 * jax.random.normal(next(keys), (1, cout), jnp.float32)
        head_params.append((w1, b1, scale, shift, w2, b2))

    # forward: backbone -> fpn -> per-level fused Pallas head (Dropout is identity in
    # inference mode; output already in the permuted NHWC layout of the PyTorch forward).
    feats = standin_backbone_fpn(x, proj_weights)
    outs = [ssd_head_pallas(feats[i], head_params[i]) for i in range(num_features)]
    outs = [jax.block_until_ready(o) for o in outs]

    # Validate the Pallas head against the pure-JAX f32 reference (bf16 MXU inputs
    # loosen the tolerance relative to a pure-f32 implementation).
    for i in range(num_features):
        ref = ssd_head_reference(feats[i], head_params[i])
        np.testing.assert_allclose(np.asarray(outs[i]), np.asarray(ref),
                                   rtol=2e-2, atol=2e-2)
        expected_shape = (N, feats[i].shape[1], feats[i].shape[2], cout)
        assert outs[i].shape == expected_shape

    print("KERNEL_OK")
</pallas_src>

<mosaic_0001>
module attributes {stable_mosaic.version = 11 : i64} {
  func.func @ssd_head_kernel(%arg0: i32, %arg1: i32, %arg2: memref<1x128x288xbf16, #tpu.memory_space<vmem>>, %arg3: memref<288x32xbf16, #tpu.memory_space<vmem>>, %arg4: memref<1x32xf32, #tpu.memory_space<vmem>>, %arg5: memref<32x128xbf16, #tpu.memory_space<vmem>>, %arg6: memref<1x128xf32, #tpu.memory_space<vmem>>, %arg7: memref<1x128x128xf32, #tpu.memory_space<vmem>>) attributes {dimension_semantics = [#tpu.dimension_semantics<parallel>, #tpu.dimension_semantics<parallel>], iteration_bounds = array<i64: 2, 2>, scalar_prefetch = 0 : i64, scratch_operands = 0 : i64, tpu.core_type = #tpu.core_type<tc>, window_params = [{transform_indices = @transform_0, window_bounds = array<i64: 1, 128, 288>}, {pipeline_mode = #tpu.pipeline_mode<synchronous>, transform_indices = @transform_1, window_bounds = array<i64: 288, 32>}, {pipeline_mode = #tpu.pipeline_mode<synchronous>, transform_indices = @transform_2, window_bounds = array<i64: 1, 32>}, {pipeline_mode = #tpu.pipeline_mode<synchronous>, transform_indices = @transform_3, window_bounds = array<i64: 32, 128>}, {pipeline_mode = #tpu.pipeline_mode<synchronous>, transform_indices = @transform_4, window_bounds = array<i64: 1, 128>}, {transform_indices = @transform_5, window_bounds = array<i64: 1, 128, 128>}]} {
    %c0 = arith.constant 0 : index
    %c0_0 = arith.constant 0 : index
    %c0_1 = arith.constant 0 : index
    %0 = vector.load %arg2[%c0, %c0_0, %c0_1] : memref<1x128x288xbf16, #tpu.memory_space<vmem>>, vector<1x128x288xbf16>
    %1 = vector.shape_cast %0 : vector<1x128x288xbf16> to vector<128x288xbf16>
    %c0_2 = arith.constant 0 : index
    %c0_3 = arith.constant 0 : index
    %2 = vector.load %arg3[%c0_2, %c0_3] : memref<288x32xbf16, #tpu.memory_space<vmem>>, vector<288x32xbf16>
    %cst = arith.constant dense<0.000000e+00> : vector<128x32xf32>
    %3 = tpu.matmul %1, %2, %cst {dimension_numbers = #tpu.dot_dimension_numbers<[1], [0], [0], [1], [0, 0, 1, 1], [], []>} : vector<128x288xbf16>, vector<288x32xbf16>, vector<128x32xf32> -> vector<128x32xf32>
    %c0_4 = arith.constant 0 : index
    %c0_5 = arith.constant 0 : index
    %4 = vector.load %arg4[%c0_4, %c0_5] : memref<1x32xf32, #tpu.memory_space<vmem>>, vector<1x32xf32>
    %5 = vector.broadcast %4 : vector<1x32xf32> to vector<128x32xf32>
    %6 = arith.addf %3, %5 : vector<128x32xf32>
    %cst_6 = arith.constant 0.000000e+00 : f32
    %7 = vector.broadcast %cst_6 : f32 to vector<128x32xf32>
    %8 = arith.maximumf %6, %7 : vector<128x32xf32>
    %9 = arith.truncf %8 : vector<128x32xf32> to vector<128x32xbf16>
    %c0_7 = arith.constant 0 : index
    %c0_8 = arith.constant 0 : index
    %10 = vector.load %arg5[%c0_7, %c0_8] : memref<32x128xbf16, #tpu.memory_space<vmem>>, vector<32x128xbf16>
    %cst_9 = arith.constant dense<0.000000e+00> : vector<128x128xf32>
    %11 = tpu.matmul %9, %10, %cst_9 {dimension_numbers = #tpu.dot_dimension_numbers<[1], [0], [0], [1], [0, 0, 1, 1], [], []>} : vector<128x32xbf16>, vector<32x128xbf16>, vector<128x128xf32> -> vector<128x128xf32>
    %c0_10 = arith.constant 0 : index
    %c0_11 = arith.constant 0 : index
    %12 = vector.load %arg6[%c0_10, %c0_11] : memref<1x128xf32, #tpu.memory_space<vmem>>, vector<1x128xf32>
    %13 = vector.broadcast %12 : vector<1x128xf32> to vector<128x128xf32>
    %14 = arith.addf %11, %13 : vector<128x128xf32>
    %c0_12 = arith.constant 0 : index
    %c0_13 = arith.constant 0 : index
    %c0_14 = arith.constant 0 : index
    %15 = vector.load %arg7[%c0_12, %c0_13, %c0_14] : memref<1x128x128xf32, #tpu.memory_space<vmem>>, vector<1x128x128xf32>
    %16 = vector.shape_cast %15 : vector<1x128x128xf32> to vector<128x128xf32>
    %17 = vector.shape_cast %14 : vector<128x128xf32> to vector<1x128x128xf32>
    tpu.vector_store %arg7[%c0_12, %c0_13, %c0_14], %17 {strides = array<i32>} : memref<1x128x128xf32, #tpu.memory_space<vmem>>, vector<1x128x128xf32>,
    return
  }
  func.func @transform_0(%arg0: i32, %arg1: i32) -> (i32, i32, i32) {
    %c0_i32 = arith.constant 0 : i32
    %c0_i32_0 = arith.constant 0 : i32
    return %arg0, %arg1, %c0_i32 : i32, i32, i32
  }
  func.func @transform_1(%arg0: i32, %arg1: i32) -> (i32, i32) {
    %c0_i32 = arith.constant 0 : i32
    %c0_i32_0 = arith.constant 0 : i32
    %c0_i32_1 = arith.constant 0 : i32
    return %c0_i32, %c0_i32_0 : i32, i32
  }
  func.func @transform_2(%arg0: i32, %arg1: i32) -> (i32, i32) {
    %c0_i32 = arith.constant 0 : i32
    %c0_i32_0 = arith.constant 0 : i32
    %c0_i32_1 = arith.constant 0 : i32
    return %c0_i32, %c0_i32_0 : i32, i32
  }
  func.func @transform_3(%arg0: i32, %arg1: i32) -> (i32, i32) {
    %c0_i32 = arith.constant 0 : i32
    %c0_i32_0 = arith.constant 0 : i32
    %c0_i32_1 = arith.constant 0 : i32
    return %c0_i32, %c0_i32_0 : i32, i32
  }
  func.func @transform_4(%arg0: i32, %arg1: i32) -> (i32, i32) {
    %c0_i32 = arith.constant 0 : i32
    %c0_i32_0 = arith.constant 0 : i32
    %c0_i32_1 = arith.constant 0 : i32
    return %c0_i32, %c0_i32_0 : i32, i32
  }
  func.func @transform_5(%arg0: i32, %arg1: i32) -> (i32, i32, i32) {
    %c0_i32 = arith.constant 0 : i32
    %c0_i32_0 = arith.constant 0 : i32
    return %arg0, %arg1, %c0_i32 : i32, i32, i32
  }
}

</mosaic_0001>

<bundles_post_ra>
// kernel: tpu_custom_call.1
= control target key start
LH: loop header
LB: loop body
LE: loop exit
PB: predicated region body
PF: predicated region fallthrough
CT: control target
= control target key end

     0   :  { %10 = vsyncpa [#allocation3], 0  ;;  %s1831_s0 = inlined_call_operand.vmem [shape: bf16[2,256,288], index: 0, kind: input, shape index: {}]   ;;  %s1832_s1 = inlined_call_operand.vmem [shape: bf16[288,32], index: 1, kind: input, shape index: {}]   ;;  %s1833_s2 = inlined_call_operand.vmem [shape: f32[1,32], index: 2, kind: input, shape index: {}]   ;;  %s1834_s3 = inlined_call_operand.vmem [shape: bf16[32,128], index: 3, kind: input, shape index: {}]   ;;  %s1835_s4 = inlined_call_operand.vmem [shape: f32[1,128], index: 4, kind: input, shape index: {}]   ;;  %s1836_s5 = inlined_call_operand.hbm [shape: f32[2,256,128], index: 5, kind: output, shape index: {}]  }
   0x1   :  { %12 = vsyncpa [#allocation3 + $0x1], 0  ;;  %s1521_s18 = smov 0   ;;  %s1523_s19 = smov 0  }
   0x2   :  { %s1525_s20 = smov 0   ;;  %s1527_s21 = smov 0  }
   0x3   :  { %s1529_s22 = smov 0   ;;  %s1531_s23 = smov 0  }
   0x4   :  { %s1533_s24 = smov 0   ;;  %s1535_s25 = smov 0  }
   0x5 LB: > { %s1065_s26 = sadd.s32 4294967295, %s1486_s25   ;;  %s1066_s27 = sadd.s32 4294967294, %s1486_s25   ;;  %s1486_s25 = sphi %s1535_s25, %s18_s25   ;;  %s1482_s24 = sphi %s1533_s24, %s1848_s24   ;;  %s1478_s23 = sphi %s1531_s23, %s1847_s23   ;;  %s1474_s22 = sphi %s1529_s22, %s1846_s22   ;;  %s1470_s21 = sphi %s1527_s21, %s1845_s21   ;;  %s1466_s20 = sphi %s1525_s20, %s1844_s20   ;;  %s1462_s19 = sphi %s1523_s19, %s1843_s19   ;;  %s1458_s18 = sphi %s1521_s18, %s1842_s18  }
   0x6   : > { %s27_s28 = sadd.s32 1, %s1478_s23  ;;  %s30_s29 = sadd.s32 1, %s1482_s24 }
   0x7   : > { %p28_p0 = scmp.ge.s32.totalorder %s27_s28, 2  ;;  %p161_p1 = scmp.ne.s32.totalorder %s1466_s20, %s1462_s19 }
   0x8   : > { %p162_p2 = scmp.eq.s32.totalorder %s1065_s26, 3  ;;  %p167_p5 = scmp.ne.s32.totalorder %s1462_s19, %s1458_s18 }
   0x9   : > { %s1850_s28 = smov (%p28_p0, %s27_s28), 0  ;;  %s1852_s29 = smov (!%p28_p0, %s30_s29), %s1482_s24 }
   0xa   : > { %s147_s30 = ssub.s32 %s1478_s23, %s1850_s28  ;;  %p1572_p3 = por %p162_p2, %p161_p1 }
   0xb   : > { %p32_p4 = scmp.ge.s32.totalorder %s1852_s29, 2  ;;  %p168_p6 = scmp.eq.s32.totalorder %s1066_s27, 3 }
   0xc   : > { %p1069_p7 = scmp.ge.s32.totalorder %s1486_s25, 1  ;;  %p212_p9 = scmp.lt.s32.totalorder %s1486_s25, 5 }
   0xd   : > { %s1854_s29 = smov (%p32_p4, %s1852_s29), 0  ;;  %p1581_p8 = por %p168_p6, %p167_p5 }
   0xe   : > { %1839 = sst [smem:[#allocation5_spill]] %s1854_s29  ;;  %s146_s8 = ssub.s32 %s1482_s24, %s1854_s29 }
   0xf   : > { %s151_s9 = sadd.s32 1, %s1466_s20  ;;  %s148_s10 = sor.u32 %s147_s30, %s146_s8 }
  0x10   : > { %p213_p10 = pnand %p1069_p7, %p212_p9  ;;  %p149_p11 = scmp.eq.s32.totalorder %s148_s10, 0 }
  0x11   : > { %v1340_v0 = vld [vmem:[%s1832_s1 + $0x40] sm:$0xff] (!%p213_p10)   ;;  %s1596_s14 = sshll.u32 (!%p213_p10), %s1470_s21, 4  ;;  %p246_p12 = scmp.lt.s32.totalorder (!%p213_p10), %s1474_s22, 1  ;;  %v1342_v2 = vld [vmem:[%s1832_s1 + $0x48] sm:$0xff] (!%p213_p10)   ;;  %v1344_v4 = vld [vmem:[%s1832_s1 + $0x50] sm:$0xff] (!%p213_p10)   ;;  %vm561_vm0 = vcmask (!%p213_p10), 261120  }
  0x12   : > { %s1590_s11 = scalar_select %p149_p11, %s1466_s20, %s151_s9  }
  0x13   : > { %216 = sbr.rel (%p213_p10) target bundleno = 564 (0x234), region = 40  ;;  %v1341_v1 = vld [vmem:[%s1832_s1] sm:$0xff] (!%p213_p10)   ;;  %1141 = vmatprep.subr.bf16.mxu0 (!%p213_p10), %v1340_v0  ;;  %p248_p13 = scmp.lt.s32.totalorder (!%p213_p10), %s1596_s14, 31  ;;  %v1343_v3 = vld [vmem:[%s1832_s1 + $0x8] sm:$0xff] (!%p213_p10)   ;;  %v1345_v5 = vld [vmem:[%s1832_s1 + $0x10] sm:$0xff] (!%p213_p10)  }
  0x14   : > { %1142 = vmatpush3.bf16.msra.mxu0 (!%p213_p10), %v1341_v1  ;;  %v1346_v6 = vld [vmem:[%s1832_s1 + $0x58] sm:$0xff] (!%p213_p10)   ;;  %v1348_v8 = vld [vmem:[%s1832_s1 + $0x60] sm:$0xff] (!%p213_p10)   ;;  %v1350_v11 = vld [vmem:[%s1832_s1 + $0x68] sm:$0xff] (!%p213_p10)   ;;  %s242_s15 = sand.u32 (!%p213_p10), 1, %s1462_s19   ;;  %s1137_s26 = sshll.u32 (!%p213_p10), %s1474_s22, 5 }
  0x15   : > { %1143 = vmatprep.subr.bf16.mxu0 (!%p213_p10), %v1342_v2  ;;  %v1347_v7 = vld [vmem:[%s1832_s1 + $0x18] sm:$0xff] (!%p213_p10)   ;;  %v1349_v9 = vld [vmem:[%s1832_s1 + $0x20] sm:$0xff] (!%p213_p10)   ;;  %v1351_v12 = vld [vmem:[%s1832_s1 + $0x28] sm:$0xff] (!%p213_p10)   ;;  %s1070_s16 = sshll.u32 (!%p213_p10), %s242_s15, 7 }
  0x16   : > { %v1355_v10 = vld [vmem:[%s1832_s1 + $0x80] sm:$0xff] (!%p213_p10)   ;;  %v1352_v13 = vld [vmem:[%s1832_s1 + $0x70] sm:$0xff] (!%p213_p10)   ;;  %v1360_v15 = vld [vmem:[%s1832_s1 + $0x88] sm:$0xff] (!%p213_p10)  }
  0x17   : > { %1225 = vmatprep.subr.bf16.mxu1 (!%p213_p10), %v1355_v10  ;;  %v1353_v18 = vld [vmem:[%s1832_s1 + $0x30] sm:$0xff] (!%p213_p10)   ;;  %v1354_v19 = vld [vmem:[%s1832_s1 + $0x78] sm:$0xff] (!%p213_p10)   ;;  %v1390_v42 = vld [vmem:[%s1834_s3] sm:$0xff] (!%p213_p10)  }
  0x18   : > { %1144 = vmatpush3.bf16.msra.mxu0 (!%p213_p10), %v1343_v3  ;;  %1226 = vmatpush3.bf16.msra.mxu1 (!%p213_p10), %v1355_v10  ;;  %v1356_v21 = vld [vmem:[%s1832_s1 + $0x38] sm:$0xff] (!%p213_p10)   ;;  %v1391_v43 = vld [vmem:[%s1834_s3 + $0x8] sm:$0xff] (!%p213_p10)   ;;  %v1699_v52 = vld [vmem:[%s1833_s2] ss:$0 sm:$0xff] (!%p213_p10) }
  0x19   : > { %1145 = vmatprep.subr.bf16.mxu0 (!%p213_p10), %v1344_v4  ;;  %1227 = vmatprep.subr.bf16.mxu1 (!%p213_p10), %v1360_v15 }
  0x1a   : > { %s247_s21 = scalar_select %p246_p12, %s1474_s22, 1 }
  0x1b   : > { %s249_s10 = scalar_select %p248_p13, %s1596_s14, 31 }
  0x1c   : > { %s1266_s12 = smul.u32 96, %s247_s21  ;;  %1146 = vmatpush3.bf16.msra.mxu0 %v1345_v5  ;;  %1228 = vmatpush3.bf16.msra.mxu1 %v1360_v15  ;;  %s1779_s22 = scalar_lea.sflag [#allocation3], %s242_s15 }
  0x1d   : > { %s1265_s13 = smul.u32 3, %s249_s10  ;;  %1147 = vmatprep.subr.bf16.mxu0 %v1346_v6  ;;  %1245 = vmatprep.subr.bf16.mxu1 %v1390_v42 }
  0x1f   : > { %s252_s27 = sadd.s32 %s1266_s12, %s1265_s13  ;;  %s1749_s13 = scalar_lea.vmem [#allocation2], %s1070_s16 }
  0x20   : > { %s1072_s9 = sshll.u32 %s252_s27, 2  ;;  %1148 = vmatpush3.bf16.msra.mxu0 %v1347_v7  ;;  %s977_s27 = sadd.s32 %s1137_s26, %s1596_s14 }
  0x21   : > { %s1635_s29 = scalar_lea.vmem %s1831_s0, %s1072_s9  ;;  %1149 = vmatprep.subr.bf16.mxu0 %v1348_v8  ;;  %s1138_s30 = sshll.u32 %s977_s27, 7 }
  0x22   : > { %v1359_v14 = vld [vmem:[%s1635_s29 + $0x4] ss:$12 sps:$4 sm:$0xff]   ;;  %v1361_v16 = vld [vmem:[%s1635_s29 + $0x8] ss:$12 sps:$4 sm:$0xff]   ;;  %v1362_v17 = vld [vmem:[%s1635_s29 + $0x20] ss:$12 sps:$4 sm:$0xff]  }
  0x23   : > { %618 = vmatprep.mubr.bf16.mxu0 %v1359_v14  ;;  %1229 = vmatprep.mubr.msk.bf16.mxu1 %vm561_vm0, %v1361_v16  ;;  %v1369_v20 = vld [vmem:[%s1635_s29 + $0x38] ss:$12 sps:$4 sm:$0xff]   ;;  %v1357_v22 = vld [vmem:[%s1635_s29] ss:$12 sps:$4 sm:$0xff]   ;;  %v1370_v23 = vld [vmem:[%s1635_s29 + $0x50] ss:$12 sps:$4 sm:$0xff]  }
  0x24   : > { %1150 = vmatpush3.bf16.msra.mxu0 %v1349_v9  ;;  %1230 = vmatmul.mubr.msk.bf16.vlgmr.msra.gmra.mrb[0].mxu1 %vm561_vm0, %v1362_v17  ;;  %v1377_v24 = vld [vmem:[%s1635_s29 + $0x68] ss:$12 sps:$4 sm:$0xff]   ;;  %v1378_v26 = vld [vmem:[%s1635_s29 + $0x80] ss:$12 sps:$4 sm:$0xff]   ;;  %v1365_v27 = vld [vmem:[%s1635_s29 + $0x18] ss:$12 sps:$4 sm:$0xff]  }
  0x25   : > { %1151 = vmatprep.subr.bf16.mxu0 %v1350_v11  ;;  %1233 = vmatprep.mubr.msk.bf16.mxu1 %vm561_vm0, %v1369_v20  ;;  %v1363_v25 = vld [vmem:[%s1635_s29 + $0x1c] ss:$12 sps:$4 sm:$0xff]   ;;  %v1385_v28 = vld [vmem:[%s1635_s29 + $0x98] ss:$12 sps:$4 sm:$0xff]   ;;  %v1366_v29 = vld [vmem:[%s1635_s29 + $0x34] ss:$12 sps:$4 sm:$0xff]  }
  0x26   : > { %v1386_v30 = vld [vmem:[%s1635_s29 + $0xb0] ss:$12 sps:$4 sm:$0xff]   ;;  %v1371_v32 = vld [vmem:[%s1635_s29 + $0x4c] ss:$12 sps:$4 sm:$0xff]   ;;  %v1373_v33 = vld [vmem:[%s1635_s29 + $0x48] ss:$12 sps:$4 sm:$0xff]   ;;  %1246 = vmatpush3.bf16.msra.mxu1 %v1390_v42 }
  0x27   : > { %v1368_v31 = vld [vmem:[%s1635_s29 + $0x30] ss:$12 sps:$4 sm:$0xff]   ;;  %v1376_v35 = vld [vmem:[%s1635_s29 + $0x60] ss:$12 sps:$4 sm:$0xff]   ;;  %v1381_v37 = vld [vmem:[%s1635_s29 + $0x78] ss:$12 sps:$4 sm:$0xff]   ;;  %1247 = vmatprep.subr.bf16.mxu1 %v1391_v43 }
  0x28   : > { %1152 = vmatpush3.bf16.msra.mxu0 %v1351_v12  ;;  %v1374_v34 = vld [vmem:[%s1635_s29 + $0x64] ss:$12 sps:$4 sm:$0xff]   ;;  %v1379_v36 = vld [vmem:[%s1635_s29 + $0x7c] ss:$12 sps:$4 sm:$0xff]   ;;  %v1382_v38 = vld [vmem:[%s1635_s29 + $0x94] ss:$12 sps:$4 sm:$0xff]  }
  0x29   : > { %1153 = vmatprep.subr.bf16.mxu0 %v1352_v13  ;;  %v1384_v39 = vld [vmem:[%s1635_s29 + $0x90] ss:$12 sps:$4 sm:$0xff]   ;;  %v1387_v40 = vld [vmem:[%s1635_s29 + $0xac] ss:$12 sps:$4 sm:$0xff]   ;;  %v1389_v41 = vld [vmem:[%s1635_s29 + $0xa8] ss:$12 sps:$4 sm:$0xff]   ;;  %s1770_s29 = scalar_lea.hbm %s1836_s5, %s1138_s30 }
  0x2a   : > { %1248 = vmatpush3.bf16.msra.mxu1 %v1391_v43  ;;  %s980_s8 = sshll.u32 %s1749_s13, 4  ;;  %s1488_s9 = smov [#allocation2]   ;;  %s1772_s8 = int_to_ptr.vmem [resolvable:$true] %s980_s8 }
  0x2b   : > { %s1392_s14 = scalar_lea.vmem %s1772_s8, 2048  ;;  %s1396_s16 = sshll.u32 %s1488_s9, 4  ;;  %s1397_s16 = int_to_ptr.vmem [resolvable:$false] %s1396_s16 }
  0x2c   : > { %1154 = vmatpush3.bf16.msra.mxu0 %v1353_v18  ;;  %1234 = vmatmul.mubr.msk.bf16.gmra.mrb[4].mxu1 %vm561_vm0, %v1370_v23  ;;  %p1393_p0 = scmp.ne.s32.totalorder %s1772_s8, %s1392_s14  ;;  %s1398_s17 = scalar_lea.vmem %s1397_s16, 4096 }
  0x2d   : > { %1155 = vmatprep.subr.bf16.mxu0 %v1354_v19  ;;  %1237 = vmatprep.mubr.msk.bf16.mxu1 %vm561_vm0, %v1377_v24  ;;  %p1399_p4 = scmp.lt.s32.totalorder %s1772_s8, %s1397_s16  ;;  %p1400_p5 = scmp.lt.s32.totalorder %s1398_s17, %s1392_s14 }
  0x2e   : > { %p1394_p1 = pnand %p1393_p0, %p1572_p3 }
  0x2f   : > { %p1401_p6 = por %p1400_p5, %p1399_p4 }
  0x30   : > { %1156 = vmatpush3.bf16.msra.mxu0 %v1356_v21  ;;  %p1395_p2 = pneg %p1394_p1 }
  0x32   : > { %p1402_p7 = pnand %p1401_p6, %p1395_p2 }
  0x33   : > { %619 = vmatmul.mubr.bf16.vlgmr.msra.gmra.mrb[0].mxu0 %v1357_v22 }
  0x34   : > { %626 = vmatprep.mubr.bf16.mxu0 %v1363_v25  ;;  %1238 = vmatmul.mubr.msk.bf16.gmra.mrb[8].mxu1 %vm561_vm0, %v1378_v26 }
  0x35   : > { %1241 = vmatprep.mubr.msk.bf16.mxu1 %vm561_vm0, %v1385_v28 }
  0x3b   : > { %627 = vmatmul.mubr.bf16.gmra.mrb[4].mxu0 %v1365_v27 }
  0x3c   : > { %634 = vmatprep.mubr.bf16.mxu0 %v1366_v29  ;;  %1242 = vmatmul.mubr.msk.bf16.gmra.mrb[12].mxu1 %vm561_vm0, %v1386_v30 }
  0x43   : > { %635 = vmatmul.mubr.bf16.gmra.mrb[8].mxu0 %v1368_v31 }
  0x44   : > { %642 = vmatprep.mubr.bf16.mxu0 %v1371_v32 }
  0x4b   : > { %643 = vmatmul.mubr.bf16.gmra.mrb[12].mxu0 %v1373_v33 }
  0x4c   : > { %650 = vmatprep.mubr.bf16.mxu0 %v1374_v34 }
  0x53   : > { %651 = vmatmul.mubr.bf16.gmra.mrb[16].mxu0 %v1376_v35 }
  0x54   : > { %658 = vmatprep.mubr.bf16.mxu0 %v1379_v36 }
  0x5b   : > { %659 = vmatmul.mubr.bf16.gmra.mrb[20].mxu0 %v1381_v37 }
  0x5c   : > { %666 = vmatprep.mubr.bf16.mxu0 %v1382_v38 }
  0x63   : > { %667 = vmatmul.mubr.bf16.gmra.mrb[24].mxu0 %v1384_v39 }
  0x64   : > { %674 = vmatprep.mubr.bf16.mxu0 %v1387_v40 }
  0x6b   : > { %675 = vmatmul.mubr.bf16.gmra.mrb[28].mxu0 %v1389_v41 }
  0xf7   : > { %v1231_v44 = vpop.f32.mrb[0].mxu1 }
  0xf8   : > { %v717_v45 = vpop.f32.mrb[1].mxu1 }
  0xf9   : > { %v1232_v46 = vpop.f32.mrb[2].mxu1 }
  0xfa   : > { %v720_v47 = vpop.f32.mrb[3].mxu1 }
  0xff   : > { %v1235_v48 = vpop.f32.mrb[4].mxu1 }
 0x100   : > { %v733_v50 = vpop.f32.mrb[5].mxu1 }
 0x101   : > { %v1236_v53 = vpop.f32.mrb[6].mxu1 }
 0x102   : > { %v736_v56 = vpop.f32.mrb[7].mxu1 }
 0x106   : > { %v1157_v49 = vpop.f32.mrb[0].mxu0 }
 0x107   : > { %v1158_v51 = vpop.f32.mrb[1].mxu0  ;;  %v1703_v62 = vpop.f32.mrb[8].mxu1 }
 0x108   : > { %v1159_v54 = vadd.f32 %v1158_v51, %v1157_v49  ;;  %v1160_v55 = vpop.f32.mrb[2].mxu0  ;;  %v749_v1 = vpop.f32.mrb[9].mxu1 }
 0x109   : > { %v1161_v57 = vpop.f32.mrb[3].mxu0  ;;  %v1705_v3 = vpop.f32.mrb[10].mxu1 }
 0x10a   : > { %v1162_v58 = vadd.f32 %v1161_v57, %v1160_v55  ;;  %v621_v59 = vadd.f32 %v1159_v54, %v1699_v52  ;;  %v752_v8 = vpop.f32.mrb[11].mxu1 }
 0x10c   : > { %v718_v60 = vadd.f32 %v717_v45, %v621_v59  ;;  %v624_v61 = vadd.f32 %v1162_v58, %v1699_v52 }
 0x10e   : > { %v721_v63 = vadd.f32 %v720_v47, %v624_v61  ;;  %v1163_v0 = vpop.f32.mrb[4].mxu0  ;;  %v780_v4 = vmax.f32 %v718_v60, 0.0 }
 0x10f   : > { %v1164_v2 = vpop.f32.mrb[5].mxu0  ;;  %v1710_v15 = vpop.f32.mrb[12].mxu1 }
 0x110   : > { %v781_v5 = vmax.f32 %v721_v63, 0.0  ;;  %v1165_v6 = vadd.f32 %v1164_v2, %v1163_v0  ;;  %v1166_v7 = vpop.f32.mrb[6].mxu0  ;;  %v1712_v18 = vpop.f32.mrb[13].mxu1 }
 0x111   : > { %v1167_v9 = vpop.f32.mrb[7].mxu0  ;;  %v1714_v20 = vpop.f32.mrb[14].mxu1 }
 0x112   : > { %v796_v10 = vpack.c.bf16 %v781_v5, %v780_v4  ;;  %v629_v11 = vadd.f32 %v1165_v6, %v1699_v52  ;;  %v1168_v12 = vadd.f32 %v1167_v9, %v1166_v7  ;;  %v1716_v25 = vpop.f32.mrb[15].mxu1 }
 0x114   : > { %v726_v13 = vadd.f32 %v1231_v44, %v629_v11  ;;  %v632_v14 = vadd.f32 %v1168_v12, %v1699_v52  ;;  %1249 = vmatprep.mubr.msk.bf16.mxu1 %vm561_vm0, %v796_v10 }
 0x116   : > { %v729_v16 = vadd.f32 %v1232_v46, %v632_v14  ;;  %v1169_v17 = vpop.f32.mrb[8].mxu0  ;;  %v782_v21 = vmax.f32 %v726_v13, 0.0 }
 0x117   : > { %v1170_v19 = vpop.f32.mrb[9].mxu0 }
 0x118   : > { %v783_v22 = vmax.f32 %v729_v16, 0.0  ;;  %v1171_v23 = vadd.f32 %v1170_v19, %v1169_v17  ;;  %v1172_v24 = vpop.f32.mrb[10].mxu0 }
 0x119   : > { %v1173_v26 = vpop.f32.mrb[11].mxu0 }
 0x11a   : > { %v797_v27 = vpack.c.bf16 %v783_v22, %v782_v21  ;;  %v1174_v28 = vadd.f32 %v1173_v26, %v1172_v24  ;;  %v637_v29 = vadd.f32 %v1171_v23, %v1699_v52 }
 0x11c   : > { %v734_v30 = vadd.f32 %v733_v50, %v637_v29  ;;  %1250 = vmatmul.mubr.msk.bf16.vlgmr.msra.gmra.mrb[16].mxu1 %vm561_vm0, %v797_v27  ;;  %v640_v31 = vadd.f32 %v1174_v28, %v1699_v52 }
 0x11e   : > { %v737_v32 = vadd.f32 %v736_v56, %v640_v31  ;;  %v1175_v33 = vpop.f32.mrb[12].mxu0  ;;  %v784_v35 = vmax.f32 %v734_v30, 0.0 }
 0x11f   : > { %v1176_v34 = vpop.f32.mrb[13].mxu0 }
 0x120   : > { %v785_v36 = vmax.f32 %v737_v32, 0.0  ;;  %v1177_v37 = vadd.f32 %v1176_v34, %v1175_v33  ;;  %v1178_v38 = vpop.f32.mrb[14].mxu0 }
 0x121   : > { %v1179_v39 = vpop.f32.mrb[15].mxu0 }
 0x122   : > { %v798_v40 = vpack.c.bf16 %v785_v36, %v784_v35  ;;  %v645_v41 = vadd.f32 %v1177_v37, %v1699_v52  ;;  %v1180_v42 = vadd.f32 %v1179_v39, %v1178_v38 }
 0x124   : > { %v742_v43 = vadd.f32 %v1235_v48, %v645_v41  ;;  %v648_v44 = vadd.f32 %v1180_v42, %v1699_v52  ;;  %1253 = vmatprep.mubr.msk.bf16.mxu1 %vm561_vm0, %v798_v40  ;;  %v1124_v40 = vld [vmem:[%s1835_s4] ss:$0 sm:$0xff] }
 0x126   : > { %v745_v45 = vadd.f32 %v1236_v53, %v648_v44  ;;  %v1181_v46 = vpop.f32.mrb[16].mxu0  ;;  %v786_v49 = vmax.f32 %v742_v43, 0.0 }
 0x127   : > { %v1182_v47 = vpop.f32.mrb[17].mxu0 }
 0x128   : > { %v787_v50 = vmax.f32 %v745_v45, 0.0  ;;  %v1183_v51 = vadd.f32 %v1182_v47, %v1181_v46  ;;  %v1184_v54 = vpop.f32.mrb[18].mxu0 }
 0x129   : > { %v1185_v55 = vpop.f32.mrb[19].mxu0 }
 0x12a   : > { %v799_v56 = vpack.c.bf16 %v787_v50, %v786_v49  ;;  %v1186_v57 = vadd.f32 %v1185_v55, %v1184_v54  ;;  %v653_v58 = vadd.f32 %v1183_v51, %v1699_v52 }
 0x12c   : > { %v750_v59 = vadd.f32 %v749_v1, %v653_v58  ;;  %1254 = vmatmul.mubr.msk.bf16.gmra.mrb[20].mxu1 %vm561_vm0, %v799_v56  ;;  %v656_v48 = vadd.f32 %v1186_v57, %v1699_v52 }
 0x12e   : > { %v753_v60 = vadd.f32 %v752_v8, %v656_v48  ;;  %v1187_v61 = vpop.f32.mrb[20].mxu0  ;;  %v788_v53 = vmax.f32 %v750_v59, 0.0 }
 0x12f   : > { %v1188_v63 = vpop.f32.mrb[21].mxu0 }
 0x130   : > { %v789_v0 = vmax.f32 %v753_v60, 0.0  ;;  %v1189_v2 = vadd.f32 %v1188_v63, %v1187_v61  ;;  %v1190_v4 = vpop.f32.mrb[22].mxu0 }
 0x131   : > { %v1191_v5 = vpop.f32.mrb[23].mxu0 }
 0x132   : > { %v800_v6 = vpack.c.bf16 %v789_v0, %v788_v53  ;;  %v661_v7 = vadd.f32 %v1189_v2, %v1699_v52  ;;  %v1192_v9 = vadd.f32 %v1191_v5, %v1190_v4 }
 0x134   : > { %v758_v10 = vadd.f32 %v1703_v62, %v661_v7  ;;  %v664_v1 = vadd.f32 %v1192_v9, %v1699_v52  ;;  %1257 = vmatprep.mubr.msk.bf16.mxu1 %vm561_vm0, %v800_v6 }
 0x136   : > { %v761_v11 = vadd.f32 %v1705_v3, %v664_v1  ;;  %v1193_v8 = vpop.f32.mrb[24].mxu0  ;;  %v790_v13 = vmax.f32 %v758_v10, 0.0 }
 0x137   : > { %v1194_v12 = vpop.f32.mrb[25].mxu0 }
 0x138   : > { %v791_v14 = vmax.f32 %v761_v11, 0.0  ;;  %v1195_v16 = vadd.f32 %v1194_v12, %v1193_v8  ;;  %v1196_v17 = vpop.f32.mrb[26].mxu0 }
 0x139   : > { %v1197_v19 = vpop.f32.mrb[27].mxu0 }
 0x13a   : > { %v801_v21 = vpack.c.bf16 %v791_v14, %v790_v13  ;;  %v1198_v22 = vadd.f32 %v1197_v19, %v1196_v17  ;;  %v669_v23 = vadd.f32 %v1195_v16, %v1699_v52 }
 0x13c   : > { %v766_v24 = vadd.f32 %v1712_v18, %v669_v23  ;;  %1258 = vmatmul.mubr.msk.bf16.gmra.mrb[24].mxu1 %vm561_vm0, %v801_v21  ;;  %v672_v62 = vadd.f32 %v1198_v22, %v1699_v52 }
 0x13e   : > { %v769_v26 = vadd.f32 %v1716_v25, %v672_v62  ;;  %v1199_v3 = vpop.f32.mrb[28].mxu0  ;;  %v792_v28 = vmax.f32 %v766_v24, 0.0 }
 0x13f   : > { %v1200_v27 = vpop.f32.mrb[29].mxu0 }
 0x140   : > { %v793_v29 = vmax.f32 %v769_v26, 0.0  ;;  %v1201_v30 = vadd.f32 %v1200_v27, %v1199_v3  ;;  %v1202_v31 = vpop.f32.mrb[30].mxu0 }
 0x141   : > { %v1203_v32 = vpop.f32.mrb[31].mxu0 }
 0x142   : > { %v802_v33 = vpack.c.bf16 %v793_v29, %v792_v28  ;;  %v677_v34 = vadd.f32 %v1201_v30, %v1699_v52  ;;  %v1204_v35 = vadd.f32 %v1203_v32, %v1202_v31 }
 0x144   : > { %v774_v18 = vadd.f32 %v1710_v15, %v677_v34  ;;  %v680_v36 = vadd.f32 %v1204_v35, %v1699_v52  ;;  %1261 = vmatprep.mubr.msk.bf16.mxu1 %vm561_vm0, %v802_v33 }
 0x146   : > { %v777_v25 = vadd.f32 %v1714_v20, %v680_v36  ;;  %v794_v37 = vmax.f32 %v774_v18, 0.0 }
 0x148   : > { %v795_v38 = vmax.f32 %v777_v25, 0.0 }
 0x14a   : > { %v803_v39 = vpack.c.bf16 %v795_v38, %v794_v37 }
 0x14c   : > { %1262 = vmatmul.mubr.msk.bf16.gmra.mrb[28].mxu1 %vm561_vm0, %v803_v39 }
 0x1ef   : > { %v1251_v41 = vpop.f32.mrb[16].mxu1 }
 0x1f0   : > { %v894_v15 = vadd.f32 %v1251_v41, %v1124_v40  ;;  %v885_v42 = vpop.f32.mrb[17].mxu1 }
 0x1f1   : > { %v886_v52 = vadd.f32 %v1124_v40, %v885_v42  ;;  %v1252_v43 = vpop.f32.mrb[18].mxu1 }
 0x1f2   : > { %950 = vst [vmem:[%s1749_s13 + $0x10] sm:$0xff] %v894_v15  ;;  %v897_v20 = vadd.f32 %v1252_v43, %v1124_v40  ;;  %v888_v44 = vpop.f32.mrb[19].mxu1 }
 0x1f3   : > { %948 = vst [vmem:[%s1749_s13] sm:$0xff] %v886_v52  ;;  %v889_v45 = vadd.f32 %v1124_v40, %v888_v44 }
 0x1f4   : > { %951 = vst [vmem:[%s1749_s13 + $0x18] sm:$0xff] %v897_v20 }
 0x1f5   : > { %949 = vst [vmem:[%s1749_s13 + $0x8] sm:$0xff] %v889_v45 }
 0x1ff   : > { %v1255_v46 = vpop.f32.mrb[20].mxu1 }
 0x200   : > { %v910_v47 = vadd.f32 %v1255_v46, %v1124_v40  ;;  %v901_v49 = vpop.f32.mrb[21].mxu1 }
 0x201   : > { %v902_v50 = vadd.f32 %v1124_v40, %v901_v49  ;;  %v1256_v51 = vpop.f32.mrb[22].mxu1 }
 0x202   : > { %954 = vst [vmem:[%s1749_s13 + $0x30] sm:$0xff] %v910_v47  ;;  %v913_v54 = vadd.f32 %v1256_v51, %v1124_v40  ;;  %v904_v55 = vpop.f32.mrb[23].mxu1 }
 0x203   : > { %952 = vst [vmem:[%s1749_s13 + $0x20] sm:$0xff] %v902_v50  ;;  %v905_v56 = vadd.f32 %v1124_v40, %v904_v55 }
 0x204   : > { %955 = vst [vmem:[%s1749_s13 + $0x38] sm:$0xff] %v913_v54 }
 0x205   : > { %953 = vst [vmem:[%s1749_s13 + $0x28] sm:$0xff] %v905_v56 }
 0x20f   : > { %v1259_v57 = vpop.f32.mrb[24].mxu1 }
 0x210   : > { %v926_v58 = vadd.f32 %v1259_v57, %v1124_v40  ;;  %v917_v59 = vpop.f32.mrb[25].mxu1 }
 0x211   : > { %v918_v48 = vadd.f32 %v1124_v40, %v917_v59  ;;  %v1260_v60 = vpop.f32.mrb[26].mxu1 }
 0x212   : > { %958 = vst [vmem:[%s1749_s13 + $0x50] sm:$0xff] %v926_v58  ;;  %v929_v61 = vadd.f32 %v1260_v60, %v1124_v40  ;;  %v920_v63 = vpop.f32.mrb[27].mxu1 }
 0x213   : > { %956 = vst [vmem:[%s1749_s13 + $0x40] sm:$0xff] %v918_v48  ;;  %v921_v53 = vadd.f32 %v1124_v40, %v920_v63 }
 0x214   : > { %959 = vst [vmem:[%s1749_s13 + $0x58] sm:$0xff] %v929_v61 }
 0x215   : > { %957 = vst [vmem:[%s1749_s13 + $0x48] sm:$0xff] %v921_v53 }
 0x21f   : > { %v1263_v0 = vpop.f32.mrb[28].mxu1 }
 0x220   : > { %v942_v2 = vadd.f32 %v1263_v0, %v1124_v40  ;;  %v933_v4 = vpop.f32.mrb[29].mxu1 }
 0x221   : > { %v934_v5 = vadd.f32 %v1124_v40, %v933_v4  ;;  %v1264_v6 = vpop.f32.mrb[30].mxu1 }
 0x222   : > { %962 = vst [vmem:[%s1749_s13 + $0x70] sm:$0xff] %v942_v2  ;;  %v945_v7 = vadd.f32 %v1264_v6, %v1124_v40  ;;  %v936_v9 = vpop.f32.mrb[31].mxu1 }
 0x223   : > { %960 = vst [vmem:[%s1749_s13 + $0x60] sm:$0xff] %v934_v5  ;;  %v937_v10 = vadd.f32 %v1124_v40, %v936_v9 }
 0x224   : > { %963 = vst [vmem:[%s1749_s13 + $0x78] sm:$0xff] %v945_v7 }
 0x225   : > { %961 = vst [vmem:[%s1749_s13 + $0x68] sm:$0xff] %v937_v10 }
 0x226   : > { %1405 = shalt.err (!%p1402_p7)
}
 0x227   : > { %s1406_s15 = scalar_lea.hbm %s1770_s29, 2048  ;;  %s1410_s26 = scalar_lea.hbm %s1836_s5, 8192 }
 0x228   : > { %p1407_p9 = scmp.ne.s32.totalorder %s1770_s29, %s1406_s15  ;;  %p1411_p12 = scmp.lt.u32.totalorder %s1770_s29, %s1836_s5 }
 0x229   : > { %p1412_p13 = scmp.lt.u32.totalorder %s1410_s26, %s1406_s15  ;;  %p1414_p1 = scmp.lt.u32.totalorder %s1406_s15, %s1770_s29 }
 0x22a   : > { %p1408_p10 = pnand %p1407_p9, %p1572_p3 }
 0x22b   : > { %p1413_p0 = por %p1412_p13, %p1411_p12 }
 0x22c   : > { %p1409_p11 = pneg %p1408_p10 }
 0x22d   : > { %p1415_p2 = por %p1414_p1, %p1413_p0 }
 0x22f   : > { %p1416_p4 = pnand %p1415_p2, %p1409_p11 }
 0x231   : > { %1419 = shalt.err (!%p1416_p4)
}
 0x232   : > { %s1489_s21 = smov 128   ;;  %s1490_s10 = smov 8  }
 0x233   : > { %1267 = dma.vmem_to_hbm [thread:$0]  (%p1572_p3), %s1772_s8, 2048, %s1770_s29, %s1779_s22, %s1489_s21, %s1489_s21, %s1490_s10  }
 0x234 PF: > { %p1273_p5 = scmp.ge.s32.totalorder %s1486_s25, 2  ;;  %s995_s14 = sand.u32 1, %s1458_s18  }
 0x235   : > { %s996_s9 = scalar_lea.sflag [#allocation3], %s995_s14 }
 0x236   : > { %p1270_p6 = pnand %p1273_p5, %p1581_p8 }
 0x238   : > { %1453 = dma.done.wait (!%p1270_p6), %s996_s9, 2048  }
 0x239   : > { %1455 = vsyncadd (!%p1270_p6), %s996_s9, 4294965248  ;;  %s18_s25 = sadd.s32 1, %s1486_s25   ;;  %s1841_s6 = sld [smem:[#allocation5_spill]] }
 0x23a   : > { %p15_p7 = scmp.ge.s32.totalorder %s18_s25, 6   ;;  %s1842_s18 = smov %s1462_s19 }
 0x23b   : > { %s1843_s19 = smov %s1466_s20  ;;  %s1844_s20 = smov %s1590_s11 }
 0x23c   : > { %s1845_s21 = smov %s1478_s23  ;;  %s1846_s22 = smov %s1482_s24 }
 0x23d   : > { %s1847_s23 = smov %s1850_s28  ;;  %17 = sbr.rel (!%p15_p7) target bundleno = 5 (0x5), region = 75 }
 0x23f   : > { %s1848_s24 = smov %s1841_s6 }
 0x244   :  { %1001 = vsyncpa [#allocation3], 1 }
 0x245   :  { %1003 = vsyncpa [#allocation3 + $0x1], 1 }

</bundles_post_ra>
